<compile_context>
chip_gen: v6e
topology: v6e:2x2x1
jax: 0.10.0
libtpu: 0.0.40
codegen_flags: <defaults>
</compile_context>

<pallas_src>
import functools

import jax
import jax.numpy as jnp
from jax import lax
from jax.experimental import pallas as pl
from jax.experimental.pallas import tpu as pltpu


def _round_up(n, m):
    return ((n + m - 1) // m) * m


# ----------------------------------------------------------------------------
# Kernel 1: input projection  gates_x = x @ W_ih^T + (b_ih + b_hh)
# One big MXU matmul per side instead of a tiny per-timestep matmul.
# ----------------------------------------------------------------------------
def _input_proj_kernel(x_ref, w_ref, b_ref, gx_ref):
    gx_ref[...] = (
        jnp.dot(x_ref[...], w_ref[...], preferred_element_type=jnp.float32)
        + b_ref[...])


def input_projection(x, wih, bias, *, row_tile=256):
    """x: (S, L, Bp, E) f32; wih: (S, E, G); bias: (S, 1, G) -> (S, L, Bp, G)."""
    S, L, Bp, E = x.shape
    G = wih.shape[-1]
    R = L * Bp
    TR = R if R <= row_tile else row_tile
    Rp = _round_up(R, TR)
    x_rows = x.reshape(S, R, E)
    if Rp != R:
        x_rows = jnp.pad(x_rows, ((0, 0), (0, Rp - R), (0, 0)))
    # bf16 MXU inputs, f32 accumulation (gates_x kept f32 for the recurrence).
    x_rows = x_rows.astype(jnp.bfloat16)
    wih_bf = wih.astype(jnp.bfloat16)

    gx = pl.pallas_call(
        _input_proj_kernel,
        out_shape=jax.ShapeDtypeStruct((S, Rp, G), jnp.float32),
        grid_spec=pltpu.PrefetchScalarGridSpec(
            num_scalar_prefetch=0,
            grid=(S, Rp // TR),
            in_specs=[
                pl.BlockSpec((pl.Squeezed(), TR, E), lambda s, r: (s, r, 0)),
                pl.BlockSpec((pl.Squeezed(), E, G), lambda s, r: (s, 0, 0)),
                pl.BlockSpec((pl.Squeezed(), 1, G), lambda s, r: (s, 0, 0)),
            ],
            out_specs=pl.BlockSpec((pl.Squeezed(), TR, G),
                                   lambda s, r: (s, r, 0)),
        ),
        compiler_params=pltpu.CompilerParams(
            dimension_semantics=("parallel", "parallel")),
    )(x_rows, wih_bf, bias)
    return gx[:, :R].reshape(S, L, Bp, G)


# ----------------------------------------------------------------------------
# Kernel 2: LSTM recurrence, time streamed through the grid.
# Returns the hidden state at the last valid timestep per sequence.
# ----------------------------------------------------------------------------
def _lstm_recurrence_kernel(maxlen_ref, gx_ref, len_ref, whh_ref, hN_ref,
                            h_sc, c_sc, *, hidden_pad):
    Hp = hidden_pad
    s = pl.program_id(0)          # side (left / right LSTM)
    t = pl.program_id(1)          # timestep

    @pl.when(t == 0)
    def _init():
        h_sc[...] = jnp.zeros_like(h_sc)
        c_sc[...] = jnp.zeros_like(c_sc)

    @pl.when(t < maxlen_ref[s])   # skip steps past max(lengths) for this side
    def _step():
        gates = gx_ref[...] + jnp.dot(h_sc[...], whh_ref[...],
                                      preferred_element_type=jnp.float32)
        i_g = jax.nn.sigmoid(gates[:, 0 * Hp:1 * Hp])
        f_g = jax.nn.sigmoid(gates[:, 1 * Hp:2 * Hp])
        g_g = jnp.tanh(gates[:, 2 * Hp:3 * Hp])
        o_g = jax.nn.sigmoid(gates[:, 3 * Hp:4 * Hp])
        c_new = f_g * c_sc[...] + i_g * g_g
        h_new = o_g * jnp.tanh(c_new)
        valid = len_ref[...] > t                       # (Bp, 1) mask
        h_sc[...] = jnp.where(valid, h_new, h_sc[...])
        c_sc[...] = jnp.where(valid, c_new, c_sc[...])

    @pl.when(t == pl.num_programs(1) - 1)
    def _finalize():
        hN_ref[...] = h_sc[...]


def lstm_last_hidden(gx, lens, whh, *, hidden_pad):
    """gx: (S, L, Bp, G) f32; lens: (S, Bp) int32; whh: (S, Hp, G) f32.

    Returns (S, Bp, Hp) f32 — last-valid-step hidden state per sequence.
    """
    S, L, Bp, G = gx.shape
    Hp = hidden_pad
    lens3 = lens.reshape(S, Bp, 1).astype(jnp.int32)
    max_len = jnp.max(lens, axis=-1).astype(jnp.int32)          # (S,)

    def gx_map(s, t, ml):
        # Clamp so steps past max(lengths) revisit the same block -> DMA skipped.
        return (s, jnp.minimum(t, jnp.maximum(ml[s], 1) - 1), 0, 0)

    kernel = functools.partial(_lstm_recurrence_kernel, hidden_pad=Hp)
    return pl.pallas_call(
        kernel,
        out_shape=jax.ShapeDtypeStruct((S, Bp, Hp), jnp.float32),
        grid_spec=pltpu.PrefetchScalarGridSpec(
            num_scalar_prefetch=1,
            grid=(S, L),
            in_specs=[
                pl.BlockSpec((pl.Squeezed(), pl.Squeezed(), Bp, G), gx_map),
                pl.BlockSpec((pl.Squeezed(), Bp, 1),
                             lambda s, t, ml: (s, 0, 0)),
                pl.BlockSpec((pl.Squeezed(), Hp, G),
                             lambda s, t, ml: (s, 0, 0)),
            ],
            out_specs=pl.BlockSpec((pl.Squeezed(), Bp, Hp),
                                   lambda s, t, ml: (s, 0, 0)),
            scratch_shapes=[pltpu.VMEM((Bp, Hp), jnp.float32),
                            pltpu.VMEM((Bp, Hp), jnp.float32)],
        ),
        compiler_params=pltpu.CompilerParams(
            dimension_semantics=("parallel", "arbitrary")),
    )(max_len, gx, lens3, whh)


# ----------------------------------------------------------------------------
# Kernel 3: dense head, split weights (no lane-dim concat):
#   out = h_l @ W[:, :H].T + h_r @ W[:, H:].T + b
# ----------------------------------------------------------------------------
def _dense_kernel(hl_ref, hr_ref, wl_ref, wr_ref, b_ref, out_ref):
    out_ref[...] = (
        jnp.dot(hl_ref[...], wl_ref[...], preferred_element_type=jnp.float32)
        + jnp.dot(hr_ref[...], wr_ref[...], preferred_element_type=jnp.float32)
        + b_ref[...])


def dense(h_l, h_r, w, b, *, H, Hp):
    """h_l, h_r: (Bp, Hp); w: torch Linear weight (P, 2H); b: (P,)."""
    Bp = h_l.shape[0]
    P = w.shape[0]
    wl = jnp.pad(jnp.transpose(w[:, :H]), ((0, Hp - H), (0, 0)))   # (Hp, P)
    wr = jnp.pad(jnp.transpose(w[:, H:]), ((0, Hp - H), (0, 0)))   # (Hp, P)
    b2 = b.reshape(1, P)
    # Tiny op; whole-array VMEM blocks, single invocation.  (P < 128 lanes is
    # accepted — the matmul is dwarfed by everything else.)
    return pl.pallas_call(
        _dense_kernel,
        out_shape=jax.ShapeDtypeStruct((Bp, P), jnp.float32),
    )(h_l, h_r, wl, wr, b2)


# ----------------------------------------------------------------------------
# Weight prep: torch layout -> lane-padded, transposed, gate-blocked.
# ----------------------------------------------------------------------------
def _prep_lstm_weights(w_ih, w_hh, b_ih, b_hh, *, H, Hp):
    """Returns wih (E, 4Hp), whh (Hp, 4Hp), bias (1, 4Hp); padding is zeros,
    so padded hidden units stay exactly 0 through the recurrence."""
    E = w_ih.shape[1]
    wih = jnp.transpose(
        jnp.pad(w_ih.reshape(4, H, E), ((0, 0), (0, Hp - H), (0, 0))),
        (2, 0, 1)).reshape(E, 4 * Hp)
    whh = jnp.transpose(
        jnp.pad(w_hh.reshape(4, H, H), ((0, 0), (0, Hp - H), (0, Hp - H))),
        (2, 0, 1)).reshape(Hp, 4 * Hp)
    bias = jnp.pad((b_ih + b_hh).reshape(4, H),
                   ((0, 0), (0, Hp - H))).reshape(1, 4 * Hp)
    return wih, whh, bias


# ----------------------------------------------------------------------------
# TD_LSTM forward
# ----------------------------------------------------------------------------
def td_lstm_forward(params, x_l_ids, x_r_ids):
    emb = params["embedding"]
    H = params["lstm_l"][1].shape[1]            # torch weight_hh_l0 is (4H, H)
    Hp = _round_up(max(H, 128), 128)            # lane-aligned hidden dim
    B, L = x_l_ids.shape
    Bp = _round_up(max(B, 8), 8)                # sublane-aligned batch

    x_l_len = jnp.sum(x_l_ids != 0, axis=-1).astype(jnp.int32)
    x_r_len = jnp.sum(x_r_ids != 0, axis=-1).astype(jnp.int32)

    # Embedding gather kept in plain XLA (data-dependent gather).
    x_l = jnp.take(emb, x_l_ids, axis=0)        # (B, L, E)
    x_r = jnp.take(emb, x_r_ids, axis=0)

    # Stack L/R sides on a leading axis (parallel grid axis -> 2 TCs on v7x),
    # pad batch to Bp, go time-major.
    x = jnp.stack([x_l, x_r])                                   # (2, B, L, E)
    x = jnp.pad(x, ((0, 0), (0, Bp - B), (0, 0), (0, 0)))
    x = jnp.transpose(x, (0, 2, 1, 3))                          # (2, L, Bp, E)

    lens = jnp.pad(jnp.stack([x_l_len, x_r_len]), ((0, 0), (0, Bp - B)))

    wih_l, whh_l, bias_l = _prep_lstm_weights(*params["lstm_l"], H=H, Hp=Hp)
    wih_r, whh_r, bias_r = _prep_lstm_weights(*params["lstm_r"], H=H, Hp=Hp)
    wih = jnp.stack([wih_l, wih_r])             # (2, E, 4Hp)
    whh = jnp.stack([whh_l, whh_r])             # (2, Hp, 4Hp)
    bias = jnp.stack([bias_l, bias_r])          # (2, 1, 4Hp)

    gx = input_projection(x, wih, bias)                          # (2, L, Bp, 4Hp)
    h_n = lstm_last_hidden(gx, lens, whh, hidden_pad=Hp)         # (2, Bp, Hp)

    out = dense(h_n[0], h_n[1], params["dense_w"], params["dense_b"],
                H=H, Hp=Hp)                                      # (Bp, P)
    return out[:B]


# ----------------------------------------------------------------------------
# Pure-JAX f32 reference (for correctness check)
# ----------------------------------------------------------------------------
def _lstm_ref(x, lengths, w_ih, w_hh, b_ih, b_hh):
    B, L, E = x.shape
    H = w_hh.shape[1]

    def cell(carry, t):
        h, c = carry
        x_t = x[:, t, :]
        gates = x_t @ w_ih.T + b_ih + h @ w_hh.T + b_hh
        i = jax.nn.sigmoid(gates[:, :H])
        f = jax.nn.sigmoid(gates[:, H:2 * H])
        g = jnp.tanh(gates[:, 2 * H:3 * H])
        o = jax.nn.sigmoid(gates[:, 3 * H:])
        c_new = f * c + i * g
        h_new = o * jnp.tanh(c_new)
        valid = (lengths > t)[:, None]
        return (jnp.where(valid, h_new, h), jnp.where(valid, c_new, c)), None

    init = (jnp.zeros((B, H), jnp.float32), jnp.zeros((B, H), jnp.float32))
    (h, _), _ = lax.scan(cell, init, jnp.arange(L))
    return h


def _td_lstm_ref(params, x_l_ids, x_r_ids):
    x_l_len = jnp.sum(x_l_ids != 0, axis=-1)
    x_r_len = jnp.sum(x_r_ids != 0, axis=-1)
    emb = params["embedding"]
    x_l = jnp.take(emb, x_l_ids, axis=0)
    x_r = jnp.take(emb, x_r_ids, axis=0)
    h_l = _lstm_ref(x_l, x_l_len, *params["lstm_l"])
    h_r = _lstm_ref(x_r, x_r_len, *params["lstm_r"])
    h = jnp.concatenate([h_l, h_r], axis=-1)
    return h @ params["dense_w"].T + params["dense_b"]


# ----------------------------------------------------------------------------
# Deterministic parameter construction
# ----------------------------------------------------------------------------
def make_params(key, vocab, embed_dim, hidden_dim, polarities_dim):
    ks = jax.random.split(key, 12)
    bound = 1.0 / jnp.sqrt(hidden_dim)

    def u(k, shape):
        return jax.random.uniform(k, shape, jnp.float32, -bound, bound)

    def lstm_params(k0, k1, k2, k3):
        return (u(k0, (4 * hidden_dim, embed_dim)),   # weight_ih_l0
                u(k1, (4 * hidden_dim, hidden_dim)),  # weight_hh_l0
                u(k2, (4 * hidden_dim,)),             # bias_ih_l0
                u(k3, (4 * hidden_dim,)))             # bias_hh_l0

    return {
        "embedding": jax.random.normal(ks[0], (vocab, embed_dim), jnp.float32),
        "lstm_l": lstm_params(ks[1], ks[2], ks[3], ks[4]),
        "lstm_r": lstm_params(ks[5], ks[6], ks[7], ks[8]),
        "dense_w": u(ks[9], (polarities_dim, 2 * hidden_dim)),
        "dense_b": u(ks[10], (polarities_dim,)),
    }


if __name__ == "__main__":
    B, L, V, E, H, P = 2, 8, 50, 32, 32, 3
    params = make_params(jax.random.PRNGKey(0), V, E, H, P)

    # token ids (0 = padding); every row has length >= 1 (as PyTorch requires)
    x_l_ids = jnp.array([[5, 7, 3, 9, 0, 0, 0, 0],
                         [2, 4, 6, 8, 10, 11, 0, 0]], dtype=jnp.int32)
    x_r_ids = jnp.array([[12, 13, 0, 0, 0, 0, 0, 0],
                         [1, 2, 3, 4, 5, 6, 7, 8]], dtype=jnp.int32)

    fwd = jax.jit(td_lstm_forward)
    out = fwd(params, x_l_ids, x_r_ids)
    out = jax.block_until_ready(out)

    ref = _td_lstm_ref(params, x_l_ids, x_r_ids)
    assert out.shape == (B, P)
    # bf16 MXU inputs on the input projection -> tolerance loosened from 1e-5.
    assert jnp.allclose(out, ref, atol=2e-2, rtol=2e-2), (out, ref)

    print("KERNEL_OK")
</pallas_src>

<mosaic_0001>
module attributes {stable_mosaic.version = 11 : i64} {
  func.func @_input_proj_kernel(%arg0: i32, %arg1: i32, %arg2: memref<1x64x32xbf16, #tpu.memory_space<vmem>>, %arg3: memref<1x32x512xbf16, #tpu.memory_space<vmem>>, %arg4: memref<1x1x512xf32, #tpu.memory_space<vmem>>, %arg5: memref<1x64x512xf32, #tpu.memory_space<vmem>>) attributes {dimension_semantics = [#tpu.dimension_semantics<parallel>, #tpu.dimension_semantics<parallel>], iteration_bounds = array<i64: 2, 1>, scalar_prefetch = 0 : i64, scratch_operands = 0 : i64, tpu.core_type = #tpu.core_type<tc>, window_params = [{transform_indices = @transform_0, window_bounds = array<i64: 1, 64, 32>}, {transform_indices = @transform_1, window_bounds = array<i64: 1, 32, 512>}, {transform_indices = @transform_2, window_bounds = array<i64: 1, 1, 512>}, {transform_indices = @transform_3, window_bounds = array<i64: 1, 64, 512>}]} {
    %c0 = arith.constant 0 : index
    %c0_0 = arith.constant 0 : index
    %c0_1 = arith.constant 0 : index
    %0 = vector.load %arg2[%c0, %c0_0, %c0_1] : memref<1x64x32xbf16, #tpu.memory_space<vmem>>, vector<1x64x32xbf16>
    %1 = vector.shape_cast %0 : vector<1x64x32xbf16> to vector<64x32xbf16>
    %c0_2 = arith.constant 0 : index
    %c0_3 = arith.constant 0 : index
    %c0_4 = arith.constant 0 : index
    %2 = vector.load %arg3[%c0_2, %c0_3, %c0_4] : memref<1x32x512xbf16, #tpu.memory_space<vmem>>, vector<1x32x512xbf16>
    %3 = vector.shape_cast %2 : vector<1x32x512xbf16> to vector<32x512xbf16>
    %cst = arith.constant dense<0.000000e+00> : vector<64x512xf32>
    %4 = tpu.matmul %1, %3, %cst {dimension_numbers = #tpu.dot_dimension_numbers<[1], [0], [0], [1], [0, 0, 1, 1], [], []>} : vector<64x32xbf16>, vector<32x512xbf16>, vector<64x512xf32> -> vector<64x512xf32>
    %c0_5 = arith.constant 0 : index
    %c0_6 = arith.constant 0 : index
    %c0_7 = arith.constant 0 : index
    %5 = vector.load %arg4[%c0_5, %c0_6, %c0_7] : memref<1x1x512xf32, #tpu.memory_space<vmem>>, vector<1x1x512xf32>
    %6 = vector.shape_cast %5 : vector<1x1x512xf32> to vector<1x512xf32>
    %7 = vector.broadcast %6 : vector<1x512xf32> to vector<64x512xf32>
    %8 = arith.addf %4, %7 : vector<64x512xf32>
    %c0_8 = arith.constant 0 : index
    %c0_9 = arith.constant 0 : index
    %c0_10 = arith.constant 0 : index
    %9 = vector.load %arg5[%c0_8, %c0_9, %c0_10] : memref<1x64x512xf32, #tpu.memory_space<vmem>>, vector<1x64x512xf32>
    %10 = vector.shape_cast %9 : vector<1x64x512xf32> to vector<64x512xf32>
    %11 = vector.shape_cast %8 : vector<64x512xf32> to vector<1x64x512xf32>
    tpu.vector_store %arg5[%c0_8, %c0_9, %c0_10], %11 {strides = array<i32>} : memref<1x64x512xf32, #tpu.memory_space<vmem>>, vector<1x64x512xf32>,
    return
  }
  func.func @transform_0(%arg0: i32, %arg1: i32) -> (i32, i32, i32) {
    %c0_i32 = arith.constant 0 : i32
    %c0_i32_0 = arith.constant 0 : i32
    return %arg0, %arg1, %c0_i32 : i32, i32, i32
  }
  func.func @transform_1(%arg0: i32, %arg1: i32) -> (i32, i32, i32) {
    %c0_i32 = arith.constant 0 : i32
    %c0_i32_0 = arith.constant 0 : i32
    %c0_i32_1 = arith.constant 0 : i32
    return %arg0, %c0_i32, %c0_i32_0 : i32, i32, i32
  }
  func.func @transform_2(%arg0: i32, %arg1: i32) -> (i32, i32, i32) {
    %c0_i32 = arith.constant 0 : i32
    %c0_i32_0 = arith.constant 0 : i32
    %c0_i32_1 = arith.constant 0 : i32
    return %arg0, %c0_i32, %c0_i32_0 : i32, i32, i32
  }
  func.func @transform_3(%arg0: i32, %arg1: i32) -> (i32, i32, i32) {
    %c0_i32 = arith.constant 0 : i32
    %c0_i32_0 = arith.constant 0 : i32
    return %arg0, %arg1, %c0_i32 : i32, i32, i32
  }
}

module attributes {stable_mosaic.version = 11 : i64} {
  func.func @_lstm_recurrence_kernel(%arg0: i32, %arg1: i32, %arg2: memref<2xi32, #tpu.memory_space<smem>>, %arg3: memref<1x1x8x512xf32, #tpu.memory_space<vmem>>, %arg4: memref<1x8x1xi32, #tpu.memory_space<vmem>>, %arg5: memref<1x128x512xf32, #tpu.memory_space<vmem>>, %arg6: memref<1x8x128xf32, #tpu.memory_space<vmem>>, %arg7: memref<8x128xf32, #tpu.memory_space<vmem>>, %arg8: memref<8x128xf32, #tpu.memory_space<vmem>>) attributes {dimension_semantics = [#tpu.dimension_semantics<parallel>, #tpu.dimension_semantics<arbitrary>], iteration_bounds = array<i64: 2, 8>, scalar_prefetch = 1 : i64, scratch_operands = 2 : i64, tpu.core_type = #tpu.core_type<tc>, window_params = [{transform_indices = @transform_0, window_bounds = array<i64: 1, 1, 8, 512>}, {transform_indices = @transform_1, window_bounds = array<i64: 1, 8, 1>}, {transform_indices = @transform_2, window_bounds = array<i64: 1, 128, 512>}, {transform_indices = @transform_3, window_bounds = array<i64: 1, 8, 128>}]} {
    %c0_i32 = arith.constant 0 : i32
    %0 = arith.cmpi eq, %arg1, %c0_i32 : i32
    %1 = arith.extui %0 : i1 to i32
    %c0_i32_0 = arith.constant 0 : i32
    %2 = arith.cmpi ne, %1, %c0_i32_0 : i32
    scf.if %2 {
      %cst = arith.constant 0.000000e+00 : f32
      %11 = vector.broadcast %cst : f32 to vector<8x128xf32>
      %c0 = arith.constant 0 : index
      %c0_3 = arith.constant 0 : index
      %12 = vector.load %arg7[%c0, %c0_3] : memref<8x128xf32, #tpu.memory_space<vmem>>, vector<8x128xf32>
      tpu.vector_store %arg7[%c0, %c0_3], %11 {strides = array<i32>} : memref<8x128xf32, #tpu.memory_space<vmem>>, vector<8x128xf32>,
      %cst_4 = arith.constant 0.000000e+00 : f32
      %13 = vector.broadcast %cst_4 : f32 to vector<8x128xf32>
      %c0_5 = arith.constant 0 : index
      %c0_6 = arith.constant 0 : index
      %14 = vector.load %arg8[%c0_5, %c0_6] : memref<8x128xf32, #tpu.memory_space<vmem>>, vector<8x128xf32>
      tpu.vector_store %arg8[%c0_5, %c0_6], %13 {strides = array<i32>} : memref<8x128xf32, #tpu.memory_space<vmem>>, vector<8x128xf32>,
    } else {
    }
    %3 = arith.index_cast %arg0 : i32 to index
    %4 = memref.load %arg2[%3] : memref<2xi32, #tpu.memory_space<smem>>
    %5 = arith.cmpi slt, %arg1, %4 : i32
    %6 = arith.extui %5 : i1 to i32
    %c0_i32_1 = arith.constant 0 : i32
    %7 = arith.cmpi ne, %6, %c0_i32_1 : i32
    scf.if %7 {
      %c0 = arith.constant 0 : index
      %c0_3 = arith.constant 0 : index
      %c0_4 = arith.constant 0 : index
      %c0_5 = arith.constant 0 : index
      %11 = vector.load %arg3[%c0, %c0_3, %c0_4, %c0_5] : memref<1x1x8x512xf32, #tpu.memory_space<vmem>>, vector<1x1x8x512xf32>
      %12 = vector.shape_cast %11 : vector<1x1x8x512xf32> to vector<8x512xf32>
      %c0_6 = arith.constant 0 : index
      %c0_7 = arith.constant 0 : index
      %13 = vector.load %arg7[%c0_6, %c0_7] : memref<8x128xf32, #tpu.memory_space<vmem>>, vector<8x128xf32>
      %c0_8 = arith.constant 0 : index
      %c0_9 = arith.constant 0 : index
      %c0_10 = arith.constant 0 : index
      %14 = vector.load %arg5[%c0_8, %c0_9, %c0_10] : memref<1x128x512xf32, #tpu.memory_space<vmem>>, vector<1x128x512xf32>
      %15 = vector.shape_cast %14 : vector<1x128x512xf32> to vector<128x512xf32>
      %cst = arith.constant dense<0.000000e+00> : vector<8x512xf32>
      %16 = tpu.matmul %13, %15, %cst {dimension_numbers = #tpu.dot_dimension_numbers<[1], [0], [0], [1], [0, 0, 1, 1], [], []>} : vector<8x128xf32>, vector<128x512xf32>, vector<8x512xf32> -> vector<8x512xf32>
      %17 = arith.addf %12, %16 : vector<8x512xf32>
      %18 = vector.extract_strided_slice %17 {offsets = [0, 0], sizes = [8, 128], strides = [1, 1]} : vector<8x512xf32> to vector<8x128xf32>
      %19 = arith.negf %18 : vector<8x128xf32>
      %20 = math.exp %19 : vector<8x128xf32>
      %cst_11 = arith.constant 1.000000e+00 : f32
      %21 = vector.broadcast %cst_11 : f32 to vector<8x128xf32>
      %22 = arith.addf %21, %20 : vector<8x128xf32>
      %23 = arith.divf %21, %22 : vector<8x128xf32>
      %24 = vector.extract_strided_slice %17 {offsets = [0, 128], sizes = [8, 128], strides = [1, 1]} : vector<8x512xf32> to vector<8x128xf32>
      %25 = arith.negf %24 : vector<8x128xf32>
      %26 = math.exp %25 : vector<8x128xf32>
      %cst_12 = arith.constant 1.000000e+00 : f32
      %27 = vector.broadcast %cst_12 : f32 to vector<8x128xf32>
      %28 = arith.addf %27, %26 : vector<8x128xf32>
      %29 = arith.divf %27, %28 : vector<8x128xf32>
      %30 = vector.extract_strided_slice %17 {offsets = [0, 256], sizes = [8, 128], strides = [1, 1]} : vector<8x512xf32> to vector<8x128xf32>
      %31 = math.tanh %30 : vector<8x128xf32>
      %32 = vector.extract_strided_slice %17 {offsets = [0, 384], sizes = [8, 128], strides = [1, 1]} : vector<8x512xf32> to vector<8x128xf32>
      %33 = arith.negf %32 : vector<8x128xf32>
      %34 = math.exp %33 : vector<8x128xf32>
      %cst_13 = arith.constant 1.000000e+00 : f32
      %35 = vector.broadcast %cst_13 : f32 to vector<8x128xf32>
      %36 = arith.addf %35, %34 : vector<8x128xf32>
      %37 = arith.divf %35, %36 : vector<8x128xf32>
      %c0_14 = arith.constant 0 : index
      %c0_15 = arith.constant 0 : index
      %38 = vector.load %arg8[%c0_14, %c0_15] : memref<8x128xf32, #tpu.memory_space<vmem>>, vector<8x128xf32>
      %39 = arith.mulf %29, %38 : vector<8x128xf32>
      %40 = arith.mulf %23, %31 : vector<8x128xf32>
      %41 = arith.addf %39, %40 : vector<8x128xf32>
      %42 = math.tanh %41 : vector<8x128xf32>
      %43 = arith.mulf %37, %42 : vector<8x128xf32>
      %c0_16 = arith.constant 0 : index
      %c0_17 = arith.constant 0 : index
      %c0_18 = arith.constant 0 : index
      %44 = vector.load %arg4[%c0_16, %c0_17, %c0_18] : memref<1x8x1xi32, #tpu.memory_space<vmem>>, vector<1x8x1xi32>
      %45 = vector.shape_cast %44 : vector<1x8x1xi32> to vector<8x1xi32>
      %46 = vector.broadcast %arg1 : i32 to vector<8x1xi32>
      %47 = arith.cmpi sgt, %45, %46 : vector<8x1xi32>
      %c0_19 = arith.constant 0 : index
      %c0_20 = arith.constant 0 : index
      %48 = vector.load %arg7[%c0_19, %c0_20] : memref<8x128xf32, #tpu.memory_space<vmem>>, vector<8x128xf32>
      %49 = vector.shape_cast %47 : vector<8x1xi1> to vector<8x1xi1>
      %50 = vector.broadcast %49 : vector<8x1xi1> to vector<8x128xi1>
      %51 = arith.select %50, %43, %48 : vector<8x128xi1>, vector<8x128xf32>
      %c0_21 = arith.constant 0 : index
      %c0_22 = arith.constant 0 : index
      %52 = vector.load %arg7[%c0_21, %c0_22] : memref<8x128xf32, #tpu.memory_space<vmem>>, vector<8x128xf32>
      tpu.vector_store %arg7[%c0_21, %c0_22], %51 {strides = array<i32>} : memref<8x128xf32, #tpu.memory_space<vmem>>, vector<8x128xf32>,
      %c0_23 = arith.constant 0 : index
      %c0_24 = arith.constant 0 : index
      %53 = vector.load %arg8[%c0_23, %c0_24] : memref<8x128xf32, #tpu.memory_space<vmem>>, vector<8x128xf32>
      %54 = vector.shape_cast %47 : vector<8x1xi1> to vector<8x1xi1>
      %55 = vector.broadcast %54 : vector<8x1xi1> to vector<8x128xi1>
      %56 = arith.select %55, %41, %53 : vector<8x128xi1>, vector<8x128xf32>
      %c0_25 = arith.constant 0 : index
      %c0_26 = arith.constant 0 : index
      %57 = vector.load %arg8[%c0_25, %c0_26] : memref<8x128xf32, #tpu.memory_space<vmem>>, vector<8x128xf32>
      tpu.vector_store %arg8[%c0_25, %c0_26], %56 {strides = array<i32>} : memref<8x128xf32, #tpu.memory_space<vmem>>, vector<8x128xf32>,
    } else {
    }
    %c7_i32 = arith.constant 7 : i32
    %8 = arith.cmpi eq, %arg1, %c7_i32 : i32
    %9 = arith.extui %8 : i1 to i32
    %c0_i32_2 = arith.constant 0 : i32
    %10 = arith.cmpi ne, %9, %c0_i32_2 : i32
    scf.if %10 {
      %c0 = arith.constant 0 : index
      %c0_3 = arith.constant 0 : index
      %11 = vector.load %arg7[%c0, %c0_3] : memref<8x128xf32, #tpu.memory_space<vmem>>, vector<8x128xf32>
      %c0_4 = arith.constant 0 : index
      %c0_5 = arith.constant 0 : index
      %c0_6 = arith.constant 0 : index
      %12 = vector.load %arg6[%c0_4, %c0_5, %c0_6] : memref<1x8x128xf32, #tpu.memory_space<vmem>>, vector<1x8x128xf32>
      %13 = vector.shape_cast %12 : vector<1x8x128xf32> to vector<8x128xf32>
      %14 = vector.shape_cast %11 : vector<8x128xf32> to vector<1x8x128xf32>
      tpu.vector_store %arg6[%c0_4, %c0_5, %c0_6], %14 {strides = array<i32>} : memref<1x8x128xf32, #tpu.memory_space<vmem>>, vector<1x8x128xf32>,
    } else {
    }
    return
  }
  func.func @transform_0(%arg0: i32, %arg1: i32, %arg2: memref<2xi32, #tpu.memory_space<smem>>) -> (i32, i32, i32, i32) {
    %0 = arith.index_cast %arg0 : i32 to index
    %1 = memref.load %arg2[%0] : memref<2xi32, #tpu.memory_space<smem>>
    %c1_i32 = arith.constant 1 : i32
    %2 = arith.maxsi %1, %c1_i32 : i32
    %c1_i32_0 = arith.constant 1 : i32
    %3 = arith.subi %2, %c1_i32_0 : i32
    %4 = arith.minsi %arg1, %3 : i32
    %c0_i32 = arith.constant 0 : i32
    %c0_i32_1 = arith.constant 0 : i32
    %c0_i32_2 = arith.constant 0 : i32
    return %arg0, %4, %c0_i32, %c0_i32_1 : i32, i32, i32, i32
  }
  func.func @transform_1(%arg0: i32, %arg1: i32, %arg2: memref<2xi32, #tpu.memory_space<smem>>) -> (i32, i32, i32) {
    %c0_i32 = arith.constant 0 : i32
    %c0_i32_0 = arith.constant 0 : i32
    %c0_i32_1 = arith.constant 0 : i32
    return %arg0, %c0_i32, %c0_i32_0 : i32, i32, i32
  }
  func.func @transform_2(%arg0: i32, %arg1: i32, %arg2: memref<2xi32, #tpu.memory_space<smem>>) -> (i32, i32, i32) {
    %c0_i32 = arith.constant 0 : i32
    %c0_i32_0 = arith.constant 0 : i32
    %c0_i32_1 = arith.constant 0 : i32
    return %arg0, %c0_i32, %c0_i32_0 : i32, i32, i32
  }
  func.func @transform_3(%arg0: i32, %arg1: i32, %arg2: memref<2xi32, #tpu.memory_space<smem>>) -> (i32, i32, i32) {
    %c0_i32 = arith.constant 0 : i32
    %c0_i32_0 = arith.constant 0 : i32
    %c0_i32_1 = arith.constant 0 : i32
    return %arg0, %c0_i32, %c0_i32_0 : i32, i32, i32
  }
}

module attributes {stable_mosaic.version = 11 : i64} {
  func.func @_dense_kernel(%arg0: memref<8x128xf32, #tpu.memory_space<vmem>>, %arg1: memref<8x128xf32, #tpu.memory_space<vmem>>, %arg2: memref<128x3xf32, #tpu.memory_space<vmem>>, %arg3: memref<128x3xf32, #tpu.memory_space<vmem>>, %arg4: memref<1x3xf32, #tpu.memory_space<vmem>>, %arg5: memref<8x3xf32, #tpu.memory_space<vmem>>) attributes {dimension_semantics = [], scalar_prefetch = 0 : i64, scratch_operands = 0 : i64, tpu.core_type = #tpu.core_type<tc>} {
    %c0 = arith.constant 0 : index
    %c0_0 = arith.constant 0 : index
    %0 = vector.load %arg0[%c0, %c0_0] : memref<8x128xf32, #tpu.memory_space<vmem>>, vector<8x128xf32>
    %c0_1 = arith.constant 0 : index
    %c0_2 = arith.constant 0 : index
    %1 = vector.load %arg2[%c0_1, %c0_2] : memref<128x3xf32, #tpu.memory_space<vmem>>, vector<128x3xf32>
    %cst = arith.constant dense<0.000000e+00> : vector<8x3xf32>
    %2 = tpu.matmul %0, %1, %cst {dimension_numbers = #tpu.dot_dimension_numbers<[1], [0], [0], [1], [0, 0, 1, 1], [], []>} : vector<8x128xf32>, vector<128x3xf32>, vector<8x3xf32> -> vector<8x3xf32>
    %c0_3 = arith.constant 0 : index
    %c0_4 = arith.constant 0 : index
    %3 = vector.load %arg1[%c0_3, %c0_4] : memref<8x128xf32, #tpu.memory_space<vmem>>, vector<8x128xf32>
    %c0_5 = arith.constant 0 : index
    %c0_6 = arith.constant 0 : index
    %4 = vector.load %arg3[%c0_5, %c0_6] : memref<128x3xf32, #tpu.memory_space<vmem>>, vector<128x3xf32>
    %cst_7 = arith.constant dense<0.000000e+00> : vector<8x3xf32>
    %5 = tpu.matmul %3, %4, %cst_7 {dimension_numbers = #tpu.dot_dimension_numbers<[1], [0], [0], [1], [0, 0, 1, 1], [], []>} : vector<8x128xf32>, vector<128x3xf32>, vector<8x3xf32> -> vector<8x3xf32>
    %6 = arith.addf %2, %5 : vector<8x3xf32>
    %c0_8 = arith.constant 0 : index
    %c0_9 = arith.constant 0 : index
    %7 = vector.load %arg4[%c0_8, %c0_9] : memref<1x3xf32, #tpu.memory_space<vmem>>, vector<1x3xf32>
    %8 = vector.broadcast %7 : vector<1x3xf32> to vector<8x3xf32>
    %9 = arith.addf %6, %8 : vector<8x3xf32>
    %c0_10 = arith.constant 0 : index
    %c0_11 = arith.constant 0 : index
    %10 = vector.load %arg5[%c0_10, %c0_11] : memref<8x3xf32, #tpu.memory_space<vmem>>, vector<8x3xf32>
    tpu.vector_store %arg5[%c0_10, %c0_11], %9 {strides = array<i32>} : memref<8x3xf32, #tpu.memory_space<vmem>>, vector<8x3xf32>,
    return
  }
}

</mosaic_0001>

<bundles_post_ra>
// kernel: td_lstm_forward.3
= control target key start
LH: loop header
LB: loop body
LE: loop exit
PB: predicated region body
PF: predicated region fallthrough
CT: control target
= control target key end

     0   :  { %s779_s12 = smov 0   ;;  %s781_s13 = smov 0   ;;  %s906_s0 = inlined_call_operand.vmem [shape: bf16[2,64,32], index: 0, kind: input, shape index: {}]   ;;  %s907_s1 = inlined_call_operand.vmem [shape: bf16[2,32,512], index: 1, kind: input, shape index: {}]   ;;  %s908_s2 = inlined_call_operand.vmem [shape: f32[2,1,512], index: 2, kind: input, shape index: {}]   ;;  %s909_s3 = inlined_call_operand.vmem [shape: f32[2,64,512], index: 3, kind: output, shape index: {}]  }
   0x1   :  { %s783_s14 = smov 0  }
   0x2 LB: > { %s25_s15 = sadd.s32 1, %s752_s13  ;;  %p660_p0 = scmp.ge.s32.totalorder %s756_s14, 1  ;;  %s756_s14 = sphi %s783_s14, %s13_s14   ;;  %s752_s13 = sphi %s781_s13, %s911_s13   ;;  %s748_s12 = sphi %s779_s12, %s910_s12  }
   0x3   : > { %p27_p1 = scmp.ge.s32.totalorder %s25_s15, 2  ;;  %p177_p2 = scmp.lt.s32.totalorder %s756_s14, 3 }
   0x5   : > { %s913_s15 = smov (%p27_p1, %s25_s15), 0  ;;  %p178_p3 = pnand %p660_p0, %p177_p2 }
   0x6   : > { %p220_p4 = scmp.lt.s32.totalorder (!%p178_p3), %s748_s12, 1 }
   0x7   : > { %181 = sbr.rel (%p178_p3) target bundleno = 250 (0xfa), region = 32 }
   0xc   : > { %v758_v0 = vmov 0   ;;  %s915_s12 = smov (!%p220_p4, %s748_s12), 1  ;;  %vm348_vm0 = vcmask 261120   ;;  %v268_v13 = vlaneseq }
   0xd   : > { %393 = vmatprep.mubr.bf16.mxu0 %v758_v0  ;;  %466 = vmatprep.mubr.bf16.mxu1 %v758_v0  ;;  %s691_s16 = sshll.u32 %s915_s12, 6  ;;  %s690_s20 = sshll.u32 %s915_s12, 5 }
   0xe   : > { %s233_s19 = scalar_lea.vmem %s907_s1, %s691_s16  ;;  %s227_s23 = scalar_lea.vmem %s906_s0, %s690_s20  ;;  %v269_v14 = vshrl.u32 %v268_v13, 7 }
   0xf   : > { %v718_v1 = vld [vmem:[%s233_s19 + $0x24] ss:$16 sps:$4 sm:$0xff]   ;;  %v720_v2 = vld [vmem:[%s233_s19 + $0x2c] ss:$16 sps:$4 sm:$0xff]   ;;  %v722_v3 = vld [vmem:[%s233_s19 + $0x20] ss:$16 sps:$4 sm:$0xff]  }
  0x10   : > { %373 = vmatprep.subr.bf16.mxu0 %v718_v1  ;;  %v723_v4 = vld [vmem:[%s233_s19 + $0x28] ss:$16 sps:$4 sm:$0xff]   ;;  %446 = vmatprep.subr.bf16.mxu1 %v720_v2  ;;  %v724_v5 = vld [vmem:[%s233_s19 + $0x4] ss:$16 sps:$4 sm:$0xff]   ;;  %v726_v6 = vld [vmem:[%s233_s19 + $0xc] ss:$16 sps:$4 sm:$0xff]  }
  0x11   : > { %374 = vmatpush1.bf16.msra.mxu0 %v722_v3  ;;  %447 = vmatpush1.bf16.msra.mxu1 %v723_v4  ;;  %v728_v7 = vld [vmem:[%s233_s19] ss:$16 sps:$4 sm:$0xff]   ;;  %v729_v8 = vld [vmem:[%s233_s19 + $0x8] ss:$16 sps:$4 sm:$0xff]   ;;  %s665_s24 = sshll.u32 %s915_s12, 2  ;;  %v270_v15 = vsub.s32 0, %v269_v14 }
  0x12   : > { %375 = vmatprep.subr.bf16.mxu0 %v724_v5  ;;  %448 = vmatprep.subr.bf16.mxu1 %v726_v6  ;;  %v730_v9 = vld [vmem:[%s227_s23] sm:$0xff]   ;;  %v731_v10 = vld [vmem:[%s227_s23 + $0x8] sm:$0xff]   ;;  %v732_v11 = vld [vmem:[%s227_s23 + $0x10] sm:$0xff]   ;;  %s237_s27 = scalar_lea.vmem %s908_s2, %s665_s24  ;;  %v278_v16 = vsub.s32 2, %v269_v14  ;;  %v274_v18 = vsub.s32 1, %v269_v14  ;;  %v282_v19 = vsub.s32 3, %v269_v14 }
  0x13   : > { %v733_v12 = vld [vmem:[%s227_s23 + $0x18] sm:$0xff]   ;;  %v266_v17 = vld [vmem:[%s237_s27] sm:$0xf]  ;;  %s692_s28 = sshll.u32 %s915_s12, 8 }
  0x14   : > { %v820_v20 = vrot.slane %v266_v17, %v270_v15  ;;  %v822_v21 = vrot.slane %v266_v17, %v278_v16  ;;  %v824_v22 = vrot.slane %v266_v17, %v274_v18  ;;  %v826_v23 = vrot.slane %v266_v17, %v282_v19  ;;  %s831_s4 = scalar_lea.vmem %s909_s3, %s692_s28 }
  0x15   : > { %376 = vmatpush1.bf16.msra.mxu0 %v728_v7  ;;  %449 = vmatpush1.bf16.msra.mxu1 %v729_v8 }
  0x18   : > { %680 = vmatmul.mubr.msk.bf16.vlgmr.msra.gmra.mxu0 %vm348_vm0, %v730_v9  ;;  %684 = vmatmul.mubr.msk.bf16.vlgmr.msra.gmra.mxu1 %vm348_vm0, %v730_v9 }
  0x19   : > { %403 = vmatprep.mubr.bf16.mxu0 %v758_v0  ;;  %476 = vmatprep.mubr.bf16.mxu1 %v758_v0 }
  0x20   : > { %681 = vmatmul.mubr.msk.bf16.gmra.mxu0 %vm348_vm0, %v731_v10  ;;  %685 = vmatmul.mubr.msk.bf16.gmra.mxu1 %vm348_vm0, %v731_v10 }
  0x21   : > { %413 = vmatprep.mubr.bf16.mxu0 %v758_v0  ;;  %486 = vmatprep.mubr.bf16.mxu1 %v758_v0 }
  0x28   : > { %682 = vmatmul.mubr.msk.bf16.gmra.mxu0 %vm348_vm0, %v732_v11  ;;  %686 = vmatmul.mubr.msk.bf16.gmra.mxu1 %vm348_vm0, %v732_v11 }
  0x29   : > { %423 = vmatprep.mubr.bf16.mxu0 %v758_v0  ;;  %496 = vmatprep.mubr.bf16.mxu1 %v758_v0 }
  0x30   : > { %683 = vmatmul.mubr.msk.bf16.gmra.mxu0 %vm348_vm0, %v733_v12  ;;  %687 = vmatmul.mubr.msk.bf16.gmra.mxu1 %vm348_vm0, %v733_v12 }
  0xd8   : > { %v395_v24 = vpop.f32.mrf.mxu0  ;;  %v468_v25 = vpop.f32.mrf.mxu1 }
  0xd9   : > { %v396_v26 = vadd.f32 %v395_v24, %v820_v20  ;;  %v469_v27 = vadd.f32 %v468_v25, %v822_v21 }
  0xda   : > { %v397_v28 = vpop.f32.mrf.mxu0  ;;  %v470_v29 = vpop.f32.mrf.mxu1 }
  0xdb   : > { %507 = vst [vmem:[%s831_s4] sm:$0xff] %v396_v26  ;;  %509 = vst [vmem:[%s831_s4 + $0x10] sm:$0xff] %v469_v27  ;;  %v398_v30 = vadd.f32 %v397_v28, %v824_v22  ;;  %v471_v31 = vadd.f32 %v470_v29, %v826_v23 }
  0xdc   : > { %v399_v32 = vpop.f32.mrf.mxu0  ;;  %v472_v33 = vpop.f32.mrf.mxu1 }
  0xdd   : > { %508 = vst [vmem:[%s831_s4 + $0x8] sm:$0xff] %v398_v30  ;;  %510 = vst [vmem:[%s831_s4 + $0x18] sm:$0xff] %v471_v31  ;;  %v400_v34 = vadd.f32 %v399_v32, %v820_v20  ;;  %v473_v35 = vadd.f32 %v472_v33, %v822_v21 }
  0xde   : > { %v401_v36 = vpop.f32.mrf.mxu0  ;;  %v474_v37 = vpop.f32.mrf.mxu1 }
  0xdf   : > { %511 = vst [vmem:[%s831_s4 + $0x20] sm:$0xff] %v400_v34  ;;  %513 = vst [vmem:[%s831_s4 + $0x30] sm:$0xff] %v473_v35  ;;  %v402_v38 = vadd.f32 %v401_v36, %v824_v22  ;;  %v475_v39 = vadd.f32 %v474_v37, %v826_v23 }
  0xe0   : > { %v405_v40 = vpop.f32.mrf.mxu0  ;;  %v478_v41 = vpop.f32.mrf.mxu1 }
  0xe1   : > { %512 = vst [vmem:[%s831_s4 + $0x28] sm:$0xff] %v402_v38  ;;  %514 = vst [vmem:[%s831_s4 + $0x38] sm:$0xff] %v475_v39  ;;  %v406_v42 = vadd.f32 %v405_v40, %v820_v20  ;;  %v479_v43 = vadd.f32 %v478_v41, %v822_v21 }
  0xe2   : > { %v407_v44 = vpop.f32.mrf.mxu0  ;;  %v480_v45 = vpop.f32.mrf.mxu1 }
  0xe3   : > { %515 = vst [vmem:[%s831_s4 + $0x40] sm:$0xff] %v406_v42  ;;  %517 = vst [vmem:[%s831_s4 + $0x50] sm:$0xff] %v479_v43  ;;  %v408_v46 = vadd.f32 %v407_v44, %v824_v22  ;;  %v481_v47 = vadd.f32 %v480_v45, %v826_v23 }
  0xe4   : > { %v409_v48 = vpop.f32.mrf.mxu0  ;;  %v482_v49 = vpop.f32.mrf.mxu1 }
  0xe5   : > { %516 = vst [vmem:[%s831_s4 + $0x48] sm:$0xff] %v408_v46  ;;  %518 = vst [vmem:[%s831_s4 + $0x58] sm:$0xff] %v481_v47  ;;  %v410_v50 = vadd.f32 %v409_v48, %v820_v20  ;;  %v483_v51 = vadd.f32 %v482_v49, %v822_v21 }
  0xe6   : > { %v411_v52 = vpop.f32.mrf.mxu0  ;;  %v484_v53 = vpop.f32.mrf.mxu1 }
  0xe7   : > { %519 = vst [vmem:[%s831_s4 + $0x60] sm:$0xff] %v410_v50  ;;  %521 = vst [vmem:[%s831_s4 + $0x70] sm:$0xff] %v483_v51  ;;  %v412_v54 = vadd.f32 %v411_v52, %v824_v22  ;;  %v485_v55 = vadd.f32 %v484_v53, %v826_v23 }
  0xe8   : > { %v415_v56 = vpop.f32.mrf.mxu0  ;;  %v488_v57 = vpop.f32.mrf.mxu1 }
  0xe9   : > { %520 = vst [vmem:[%s831_s4 + $0x68] sm:$0xff] %v412_v54  ;;  %522 = vst [vmem:[%s831_s4 + $0x78] sm:$0xff] %v485_v55  ;;  %v416_v58 = vadd.f32 %v415_v56, %v820_v20  ;;  %v489_v59 = vadd.f32 %v488_v57, %v822_v21 }
  0xea   : > { %v417_v60 = vpop.f32.mrf.mxu0  ;;  %v490_v61 = vpop.f32.mrf.mxu1 }
  0xeb   : > { %523 = vst [vmem:[%s831_s4 + $0x80] sm:$0xff] %v416_v58  ;;  %525 = vst [vmem:[%s831_s4 + $0x90] sm:$0xff] %v489_v59  ;;  %v418_v62 = vadd.f32 %v417_v60, %v824_v22  ;;  %v491_v63 = vadd.f32 %v490_v61, %v826_v23 }
  0xec   : > { %v419_v0 = vpop.f32.mrf.mxu0  ;;  %v492_v1 = vpop.f32.mrf.mxu1 }
  0xed   : > { %524 = vst [vmem:[%s831_s4 + $0x88] sm:$0xff] %v418_v62  ;;  %526 = vst [vmem:[%s831_s4 + $0x98] sm:$0xff] %v491_v63  ;;  %v420_v2 = vadd.f32 %v419_v0, %v820_v20  ;;  %v493_v3 = vadd.f32 %v492_v1, %v822_v21 }
  0xee   : > { %v421_v4 = vpop.f32.mrf.mxu0  ;;  %v494_v5 = vpop.f32.mrf.mxu1 }
  0xef   : > { %527 = vst [vmem:[%s831_s4 + $0xa0] sm:$0xff] %v420_v2  ;;  %529 = vst [vmem:[%s831_s4 + $0xb0] sm:$0xff] %v493_v3  ;;  %v422_v6 = vadd.f32 %v421_v4, %v824_v22  ;;  %v495_v7 = vadd.f32 %v494_v5, %v826_v23 }
  0xf0   : > { %v425_v8 = vpop.f32.mrf.mxu0  ;;  %v498_v9 = vpop.f32.mrf.mxu1 }
  0xf1   : > { %528 = vst [vmem:[%s831_s4 + $0xa8] sm:$0xff] %v422_v6  ;;  %530 = vst [vmem:[%s831_s4 + $0xb8] sm:$0xff] %v495_v7  ;;  %v426_v10 = vadd.f32 %v425_v8, %v820_v20  ;;  %v499_v11 = vadd.f32 %v498_v9, %v822_v21 }
  0xf2   : > { %v427_v12 = vpop.f32.mrf.mxu0  ;;  %v500_v13 = vpop.f32.mrf.mxu1 }
  0xf3   : > { %531 = vst [vmem:[%s831_s4 + $0xc0] sm:$0xff] %v426_v10  ;;  %533 = vst [vmem:[%s831_s4 + $0xd0] sm:$0xff] %v499_v11  ;;  %v428_v14 = vadd.f32 %v427_v12, %v824_v22  ;;  %v501_v15 = vadd.f32 %v500_v13, %v826_v23 }
  0xf4   : > { %v429_v16 = vpop.f32.mrf.mxu0  ;;  %v502_v17 = vpop.f32.mrf.mxu1 }
  0xf5   : > { %532 = vst [vmem:[%s831_s4 + $0xc8] sm:$0xff] %v428_v14  ;;  %534 = vst [vmem:[%s831_s4 + $0xd8] sm:$0xff] %v501_v15  ;;  %v430_v18 = vadd.f32 %v429_v16, %v820_v20  ;;  %v503_v19 = vadd.f32 %v502_v17, %v822_v21 }
  0xf6   : > { %v431_v24 = vpop.f32.mrf.mxu0  ;;  %v504_v25 = vpop.f32.mrf.mxu1 }
  0xf7   : > { %535 = vst [vmem:[%s831_s4 + $0xe0] sm:$0xff] %v430_v18  ;;  %537 = vst [vmem:[%s831_s4 + $0xf0] sm:$0xff] %v503_v19  ;;  %v432_v26 = vadd.f32 %v431_v24, %v824_v22  ;;  %v505_v27 = vadd.f32 %v504_v25, %v826_v23 }
  0xf9   : > { %536 = vst [vmem:[%s831_s4 + $0xe8] sm:$0xff] %v432_v26  ;;  %538 = vst [vmem:[%s831_s4 + $0xf8] sm:$0xff] %v505_v27 }
  0xfa PF: > { %s13_s14 = sadd.s32 1, %s756_s14   ;;  %s910_s12 = smov %s752_s13 }
  0xfb   : > { %p10_p5 = scmp.ge.s32.totalorder %s13_s14, 4   ;;  %s911_s13 = smov %s913_s15 }
  0xfd   :  { %12 = sbr.rel (!%p10_p5) target bundleno = 2 (0x2), region = 68 }

// kernel: td_lstm_forward.4
= control target key start
LH: loop header
LB: loop body
LE: loop exit
PB: predicated region body
PF: predicated region fallthrough
CT: control target
= control target key end

     0   :  { %s975_s0 = inlined_call_operand.vmem [shape: s32[2], index: 0, kind: input, shape index: {}]   ;;  %s976_s1 = inlined_call_operand.vmem [shape: f32[2,8,8,512], index: 1, kind: input, shape index: {}]   ;;  %s977_s2 = inlined_call_operand.vmem [shape: s32[2,8,1], index: 2, kind: input, shape index: {}]   ;;  %s978_s3 = inlined_call_operand.vmem [shape: f32[2,128,512], index: 3, kind: input, shape index: {}]   ;;  %s979_s4 = inlined_call_operand.vmem [shape: f32[2,8,128], index: 4, kind: output, shape index: {}]  }
   0x1   :  { %s9_s17 = sshll.u32 %s975_s0, 4  ;;  %s10_s17 = int_to_ptr.vmem [resolvable:$true] %s9_s17 }
   0x2   :  { %s733_s18 = scalar_lea.vmem %s10_s17, 16  ;;  %p738_p1 = scmp.lt.s32.totalorder %s10_s17, %s10_s17 }
   0x3   :  { %p734_p0 = scmp.ne.s32.totalorder %s10_s17, %s733_s18  ;;  %p739_p2 = scmp.lt.s32.totalorder %s733_s18, %s733_s18 }
   0x5   :  { %p740_p3 = por %p739_p2, %p738_p1 }
   0x7   :  { %p741_p4 = pnand %p740_p3, %p734_p0 }
   0x9   :  { %744 = shalt.err (!%p741_p4)  }
   0xa   :  { %s787_s19 = smov [#allocation5]  }
   0xb   :  { %12 = dma.vmem_to_smem %s10_s17, 16, %s787_s19, [#allocation4] }
   0xc   :  { %765 = dma.done.wait [#allocation4], 16 }
   0xd   :  { %766 = vsyncadd [#allocation4], 4294967280 }
   0xe   :  { %14 = sfence }
   0xf   :  { %s819_s20 = smov 0   ;;  %s821_s21 = smov 0  }
  0x10   :  { %s823_s22 = smov 0   ;;  %s825_s0 = smov 0  }
  0x11   :  { %s827_s23 = smov 0  }
  0x12 LB: > { %s29_s24 = sadd.s32 1, %s777_s22  ;;  %s32_s25 = sadd.s32 1, %s781_s0  ;;  %s785_s23 = sphi %s827_s23, %s20_s23   ;;  %s781_s0 = sphi %s825_s0, %s983_s0   ;;  %s777_s22 = sphi %s823_s22, %s982_s22   ;;  %s773_s21 = sphi %s821_s21, %s981_s21   ;;  %s769_s20 = sphi %s819_s20, %s980_s20  }
  0x13   : > { %p30_p5 = scmp.ge.s32.totalorder %s29_s24, 8  ;;  %p654_p6 = scmp.ge.s32.totalorder %s785_s23, 1 }
  0x14   : > { %p205_p7 = scmp.lt.s32.totalorder %s785_s23, 17 }
  0x15   : > { %s985_s24 = smov (%p30_p5, %s29_s24), 0  ;;  %s987_s25 = smov (!%p30_p5, %s32_s25), %s781_s0 }
  0x16   : > { %p206_p8 = pnand %p654_p6, %p205_p7  ;;  %p34_p9 = scmp.ge.s32.totalorder %s987_s25, 2 }
  0x17   : > { %s247_s26 = sld [smem:[#allocation5 + %s773_s21]] (!%p206_p8)  ;;  %p253_p10 = scmp.lt.s32.totalorder (!%p206_p8), %s773_s21, 1 }
  0x18   : > { %s989_s25 = smov (%p34_p9, %s987_s25), 0  ;;  %209 = sbr.rel (%p206_p8) target bundleno = 354 (0x162), region = 32 }
  0x19   : > { %p663_p0 = scmp.ne.s32.totalorder (!%p206_p8), %s769_s20, 0 }
  0x1d   : > { %s254_s27 = scalar_select %p253_p10, %s773_s21, 1 }
  0x1e   : > { %p248_p11 = scmp.gt.s32.totalorder %s247_s26, 1 }
  0x1f   : > { %s659_s28 = sshll.u32 %s254_s27, 3  ;;  %s671_s6 = sshll.u32 %s254_s27, 9 }
  0x20   : > { %s859_s5 = scalar_lea.vmem %s977_s2, %s659_s28  ;;  %s864_s9 = scalar_lea.vmem %s978_s3, %s671_s6 }
  0x21   : > { %s869_s12 = scalar_lea.vmem %s979_s4, %s659_s28  ;;  %s991_s26 = smov (!%p248_p11, %s247_s26), 1 }
  0x22   : > { %s655_s13 = sadd.s32 4294967295, %s991_s26  ;;  %s657_s15 = sshll.u32 %s254_s27, 5 }
  0x23   : > { %p251_p12 = scmp.lt.s32.totalorder %s769_s20, %s655_s13 }
  0x25   : > { %s252_s14 = scalar_select %p251_p12, %s769_s20, %s655_s13 }
  0x27   : > { %p255_p13 = scmp.lt.s32.totalorder %s252_s14, 7 }
  0x29   : > { %s993_s14 = smov (!%p255_p13, %s252_s14), 7  ;;  %284 = sbr.rel (%p663_p0) target bundleno = 48 (0x30), region = 36 }
  0x2a   : > { %s656_s16 = sshll.u32 %s993_s14, 2 }
  0x2b   : > { %s259_s17 = sadd.s32 %s657_s15, %s656_s16 }
  0x2c   : > { %s658_s18 = sshll.u32 %s259_s17, 3 }
  0x2d   : > { %s876_s30 = scalar_lea.vmem %s976_s1, %s658_s18 }
  0x2e   : > { %v788_v0 = vmov 0.0  }
  0x2f   : > { %285 = vst [vmem:[#allocation2] sm:$0xff] %v788_v0  ;;  %286 = vst [vmem:[#allocation3] sm:$0xff] %v788_v0 }
  0x30 PF: > { %s287_s26 = sld [smem:[#allocation5 + %s773_s21]] }
  0x36   : > { %p664_p1 = scmp.ge.s32.totalorder %s769_s20, %s287_s26 }
  0x38   : > { %291 = sbr.rel (%p664_p1) target bundleno = 345 (0x159), region = 40 }
  0x3d   : > { %v358_v1 = vld [vmem:[%s864_s9 + $0x1e8] sm:$0xff]  ;;  %v357_v2 = vld [vmem:[%s864_s9 + $0x1e0] sm:$0xff]  ;;  %v789_v5 = vmov 0.0   ;;  %v790_v8 = vmov 0   ;;  %v360_v11 = vld [vmem:[%s864_s9 + $0x1f8] sm:$0xff]  ;;  %v533_v55 = vstv %s769_s20 }
  0x3e   : > { %v354_v3 = vld [vmem:[%s864_s9 + $0x1c8] sm:$0xff]  ;;  %361 = vmatprep.subr.mxu0 %v358_v1  ;;  %v353_v4 = vld [vmem:[%s864_s9 + $0x1c0] sm:$0xff]  ;;  %425 = vmatprep.mubr.f32.mxu0 %v789_v5  ;;  %v359_v13 = vld [vmem:[%s864_s9 + $0x1f0] sm:$0xff] }
  0x3f   : > { %362 = vmatpush1.msra.mxu0 %v357_v2  ;;  %v350_v6 = vld [vmem:[%s864_s9 + $0x1a8] sm:$0xff]  ;;  %496 = vmatprep.mubr.f32.mxu1 %v789_v5  ;;  %v349_v7 = vld [vmem:[%s864_s9 + $0x1a0] sm:$0xff]  ;;  %v356_v15 = vld [vmem:[%s864_s9 + $0x1d8] sm:$0xff] }
  0x40   : > { %363 = vmatprep.subr.mxu0 %v354_v3  ;;  %716 = vset.pattern.permute.xlu0 %v790_v8  ;;  %v346_v9 = vld [vmem:[%s864_s9 + $0x188] sm:$0xff]  ;;  %v345_v10 = vld [vmem:[%s864_s9 + $0x180] sm:$0xff]  ;;  %v355_v16 = vld [vmem:[%s864_s9 + $0x1d0] sm:$0xff] }
  0x41   : > { %364 = vmatpush1.msra.mxu0 %v353_v4  ;;  %v342_v12 = vld [vmem:[%s864_s9 + $0x168] sm:$0xff]  ;;  %432 = vmatprep.subr.mxu1 %v360_v11  ;;  %v341_v14 = vld [vmem:[%s864_s9 + $0x160] sm:$0xff]  ;;  %v352_v18 = vld [vmem:[%s864_s9 + $0x1b8] sm:$0xff] }
  0x42   : > { %365 = vmatprep.subr.mxu0 %v350_v6  ;;  %433 = vmatpush1.msra.mxu1 %v359_v13  ;;  %v338_v17 = vld [vmem:[%s864_s9 + $0x148] sm:$0xff]  ;;  %v337_v19 = vld [vmem:[%s864_s9 + $0x140] sm:$0xff]  ;;  %v351_v20 = vld [vmem:[%s864_s9 + $0x1b0] sm:$0xff] }
  0x43   : > { %366 = vmatpush1.msra.mxu0 %v349_v7  ;;  %434 = vmatprep.subr.mxu1 %v356_v15  ;;  %v348_v21 = vld [vmem:[%s864_s9 + $0x198] sm:$0xff]  ;;  %v334_v22 = vld [vmem:[%s864_s9 + $0x128] sm:$0xff]  ;;  %v347_v23 = vld [vmem:[%s864_s9 + $0x190] sm:$0xff] }
  0x44   : > { %367 = vmatprep.subr.mxu0 %v346_v9  ;;  %435 = vmatpush1.msra.mxu1 %v355_v16  ;;  %v333_v24 = vld [vmem:[%s864_s9 + $0x120] sm:$0xff]  ;;  %v344_v25 = vld [vmem:[%s864_s9 + $0x178] sm:$0xff]  ;;  %v330_v26 = vld [vmem:[%s864_s9 + $0x108] sm:$0xff] }
  0x45   : > { %368 = vmatpush1.msra.mxu0 %v345_v10  ;;  %436 = vmatprep.subr.mxu1 %v352_v18  ;;  %v343_v27 = vld [vmem:[%s864_s9 + $0x170] sm:$0xff]  ;;  %v329_v28 = vld [vmem:[%s864_s9 + $0x100] sm:$0xff]  ;;  %v340_v29 = vld [vmem:[%s864_s9 + $0x158] sm:$0xff] }
  0x46   : > { %369 = vmatprep.subr.mxu0 %v342_v12  ;;  %437 = vmatpush1.msra.mxu1 %v351_v20  ;;  %v326_v30 = vld [vmem:[%s864_s9 + $0xe8] sm:$0xff]  ;;  %v339_v31 = vld [vmem:[%s864_s9 + $0x150] sm:$0xff]  ;;  %v325_v32 = vld [vmem:[%s864_s9 + $0xe0] sm:$0xff] }
  0x47   : > { %370 = vmatpush1.msra.mxu0 %v341_v14  ;;  %438 = vmatprep.subr.mxu1 %v348_v21  ;;  %v336_v33 = vld [vmem:[%s864_s9 + $0x138] sm:$0xff]  ;;  %v322_v34 = vld [vmem:[%s864_s9 + $0xc8] sm:$0xff]  ;;  %v335_v35 = vld [vmem:[%s864_s9 + $0x130] sm:$0xff] }
  0x48   : > { %371 = vmatprep.subr.mxu0 %v338_v17  ;;  %439 = vmatpush1.msra.mxu1 %v347_v23  ;;  %v321_v36 = vld [vmem:[%s864_s9 + $0xc0] sm:$0xff]  ;;  %v332_v37 = vld [vmem:[%s864_s9 + $0x118] sm:$0xff]  ;;  %v318_v38 = vld [vmem:[%s864_s9 + $0xa8] sm:$0xff] }
  0x49   : > { %372 = vmatpush1.msra.mxu0 %v337_v19  ;;  %440 = vmatprep.subr.mxu1 %v344_v25  ;;  %v331_v39 = vld [vmem:[%s864_s9 + $0x110] sm:$0xff]  ;;  %v317_v40 = vld [vmem:[%s864_s9 + $0xa0] sm:$0xff]  ;;  %v328_v41 = vld [vmem:[%s864_s9 + $0xf8] sm:$0xff] }
  0x4a   : > { %373 = vmatprep.subr.mxu0 %v334_v22  ;;  %441 = vmatpush1.msra.mxu1 %v343_v27  ;;  %v314_v42 = vld [vmem:[%s864_s9 + $0x88] sm:$0xff]  ;;  %v327_v43 = vld [vmem:[%s864_s9 + $0xf0] sm:$0xff]  ;;  %v313_v44 = vld [vmem:[%s864_s9 + $0x80] sm:$0xff] }
  0x4b   : > { %374 = vmatpush1.msra.mxu0 %v333_v24  ;;  %442 = vmatprep.subr.mxu1 %v340_v29  ;;  %v324_v45 = vld [vmem:[%s864_s9 + $0xd8] sm:$0xff]  ;;  %v310_v46 = vld [vmem:[%s864_s9 + $0x68] sm:$0xff]  ;;  %v323_v47 = vld [vmem:[%s864_s9 + $0xd0] sm:$0xff] }
  0x4c   : > { %375 = vmatprep.subr.mxu0 %v330_v26  ;;  %443 = vmatpush1.msra.mxu1 %v339_v31  ;;  %v309_v48 = vld [vmem:[%s864_s9 + $0x60] sm:$0xff]  ;;  %v320_v49 = vld [vmem:[%s864_s9 + $0xb8] sm:$0xff]  ;;  %v306_v50 = vld [vmem:[%s864_s9 + $0x48] sm:$0xff] }
  0x4d   : > { %376 = vmatpush1.msra.mxu0 %v329_v28  ;;  %444 = vmatprep.subr.mxu1 %v336_v33  ;;  %v319_v51 = vld [vmem:[%s864_s9 + $0xb0] sm:$0xff]  ;;  %v305_v52 = vld [vmem:[%s864_s9 + $0x40] sm:$0xff]  ;;  %v316_v53 = vld [vmem:[%s864_s9 + $0x98] sm:$0xff] }
  0x4e   : > { %377 = vmatprep.subr.mxu0 %v326_v30  ;;  %445 = vmatpush1.msra.mxu1 %v335_v35  ;;  %v532_v54 = vld [vmem:[%s859_s5] sm:$0xff]  ;;  %v302_v56 = vld [vmem:[%s864_s9 + $0x28] sm:$0xff]  ;;  %v315_v57 = vld [vmem:[%s864_s9 + $0x90] sm:$0xff] }
  0x4f   : > { %378 = vmatpush1.msra.mxu0 %v325_v32  ;;  %446 = vmatprep.subr.mxu1 %v332_v37  ;;  %v301_v58 = vld [vmem:[%s864_s9 + $0x20] sm:$0xff]  ;;  %v312_v59 = vld [vmem:[%s864_s9 + $0x78] sm:$0xff]  ;;  %v298_v60 = vld [vmem:[%s864_s9 + $0x8] sm:$0xff]  ;;  %vm534_vm0 = vcmp.gt.s32.totalorder %v532_v54, %v533_v55 }
  0x50   : > { %379 = vmatprep.subr.mxu0 %v322_v34  ;;  %447 = vmatpush1.msra.mxu1 %v331_v39  ;;  %v311_v61 = vld [vmem:[%s864_s9 + $0x70] sm:$0xff]  ;;  %v297_v62 = vld [vmem:[%s864_s9] sm:$0xff]  ;;  %v308_v63 = vld [vmem:[%s864_s9 + $0x58] sm:$0xff]  ;;  %v535_v3 = vsel %vm534_vm0, 1, %v790_v8 }
  0x51   : > { %380 = vmatpush1.msra.mxu0 %v321_v36  ;;  %448 = vmatprep.subr.mxu1 %v328_v41  ;;  %v943_v0 = vld [vmem:[#allocation2] sm:$0xff]  ;;  %v307_v1 = vld [vmem:[%s864_s9 + $0x50] sm:$0xff]  ;;  %v304_v2 = vld [vmem:[%s864_s9 + $0x38] sm:$0xff] }
  0x52   : > { %381 = vmatprep.subr.mxu0 %v318_v38  ;;  %449 = vmatpush1.msra.mxu1 %v327_v43  ;;  %v303_v4 = vld [vmem:[%s864_s9 + $0x30] sm:$0xff]  ;;  %v300_v5 = vld [vmem:[%s864_s9 + $0x18] sm:$0xff]  ;;  %v292_v7 = vld [vmem:[%s876_s30] sm:$0xff] }
  0x53   : > { %382 = vmatpush1.msra.mxu0 %v317_v40  ;;  %450 = vmatprep.subr.mxu1 %v324_v45  ;;  %v299_v6 = vld [vmem:[%s864_s9 + $0x10] sm:$0xff]  ;;  %v293_v9 = vld [vmem:[%s876_s30 + $0x8] sm:$0xff]  ;;  %v295_v16 = vld [vmem:[%s876_s30 + $0x18] sm:$0xff] }
  0x54   : > { %383 = vmatprep.subr.mxu0 %v314_v42  ;;  %451 = vmatpush1.msra.mxu1 %v323_v47  ;;  %v294_v18 = vld [vmem:[%s876_s30 + $0x10] sm:$0xff]  ;;  %v542_v29 = vld [vmem:[#allocation3] sm:$0xff] }
  0x55   : > { %384 = vmatpush1.msra.mxu0 %v313_v44  ;;  %452 = vmatprep.subr.mxu1 %v320_v49 }
  0x56   : > { %385 = vmatprep.subr.mxu0 %v310_v46  ;;  %453 = vmatpush1.msra.mxu1 %v319_v51 }
  0x57   : > { %386 = vmatpush1.msra.mxu0 %v309_v48  ;;  %454 = vmatprep.subr.mxu1 %v316_v53 }
  0x58   : > { %387 = vmatprep.subr.mxu0 %v306_v50  ;;  %455 = vmatpush1.msra.mxu1 %v315_v57 }
  0x59   : > { %388 = vmatpush1.msra.mxu0 %v305_v52  ;;  %456 = vmatprep.subr.mxu1 %v312_v59 }
  0x5a   : > { %389 = vmatprep.subr.mxu0 %v302_v56  ;;  %457 = vmatpush1.msra.mxu1 %v311_v61 }
  0x5b   : > { %390 = vmatpush1.msra.mxu0 %v301_v58  ;;  %458 = vmatprep.subr.mxu1 %v308_v63 }
  0x5c   : > { %391 = vmatprep.subr.mxu0 %v298_v60  ;;  %459 = vmatpush1.msra.mxu1 %v307_v1 }
  0x5d   : > { %392 = vmatpush1.msra.mxu0 %v297_v62  ;;  %460 = vmatprep.subr.mxu1 %v304_v2 }
  0x5e   : > { %426 = vmatmul.mubr.f32.vlgmr.msra.gmra.mxu0 %v943_v0  ;;  %537 = vperm.xlu0 %716, %v535_v3  }
  0x5f   : > { %461 = vmatpush1.msra.mxu1 %v303_v4 }
  0x60   : > { %462 = vmatprep.subr.mxu1 %v300_v5 }
  0x61   : > { %463 = vmatpush1.msra.mxu1 %v299_v6 }
  0x62   : > { %497 = vmatmul.mubr.f32.vlgmr.msra.gmra.mxu1 %v943_v0 }
  0xd9   : > { %v538_v30 = vpop.permute.xlu0 %537 }
  0xda   : > { %vm539_vm1 = vcmp.eq.s32.totalorder %v538_v30, 1 }
 0x11e   : > { %v427_v8 = vpop.f32.mrf.mxu0 }
 0x11f   : > { %v503_v10 = vadd.f32 %v427_v8, %v292_v7 }
 0x120   : > { %v429_v11 = vpop.f32.mrf.mxu0 }
 0x121   : > { %v665_v12 = vmul.f32 -1.442695, %v503_v10  ;;  %v504_v13 = vadd.f32 %v429_v11, %v293_v9 }
 0x122   : > { %v498_v15 = vpop.f32.mrf.mxu1 }
 0x123   : > { %717 = vpow2.f32 %v665_v12  ;;  %v666_v14 = vmul.f32 -1.442695, %v504_v13  ;;  %v505_v20 = vadd.f32 %v498_v15, %v294_v18 }
 0x124   : > { %v500_v17 = vpop.f32.mrf.mxu1 }
 0x125   : > { %719 = vpow2.f32 %v666_v14  ;;  %v506_v19 = vadd.f32 %v500_v17, %v295_v16 }
 0x126   : > { %721 = vtanh.f32 %v505_v20 }
 0x127   : > { %v667_v21 = vmul.f32 -1.442695, %v506_v19 }
 0x129   : > { %723 = vpow2.f32 %v667_v21 }
 0x130   : > { %v718_v22 = vpop.eup %717 }
 0x131   : > { %v510_v23 = vadd.f32 1.0, %v718_v22 }
 0x132   : > { %v720_v24 = vpop.eup %719 }
 0x133   : > { %725 = vrcp.f32 %v510_v23  ;;  %v516_v25 = vadd.f32 1.0, %v720_v24  ;;  %v722_v26 = vpop.eup %721 }
 0x135   : > { %727 = vrcp.f32 %v516_v25 }
 0x136   : > { %v724_v27 = vpop.eup %723 }
 0x137   : > { %v523_v32 = vadd.f32 1.0, %v724_v27 }
 0x139   : > { %729 = vrcp.f32 %v523_v32 }
 0x140   : > { %v726_v28 = vpop.eup %725 }
 0x141   : > { %v528_v34 = vmul.f32 %v726_v28, %v722_v26 }
 0x142   : > { %v728_v31 = vpop.eup %727 }
 0x143   : > { %v527_v33 = vmul.f32 %v728_v31, %v542_v29 }
 0x145   : > { %v529_v35 = vadd.f32 %v528_v34, %v527_v33 }
 0x146   : > { %v730_v37 = vpop.eup %729 }
 0x147   : > { %731 = vtanh.f32 %v529_v35  ;;  %v543_v36 = vsel %vm539_vm1, %v529_v35, %v542_v29 }
 0x148   : > { %544 = vst [vmem:[#allocation3] sm:$0xff] %v543_v36 }
 0x154   : > { %v732_v38 = vpop.eup %731 }
 0x155   : > { %v531_v39 = vmul.f32 %v732_v38, %v730_v37 }
 0x157   : > { %v540_v40 = vsel %vm539_vm1, %v531_v39, %v943_v0 }
 0x158   : > { %541 = vst [vmem:[#allocation2] sm:$0xff] %v540_v40 }
 0x159 PF: > { %p668_p2 = scmp.ne.s32.totalorder %s769_s20, 7 }
 0x15b   : > { %548 = sbr.rel (%p668_p2) target bundleno = 354 (0x162), region = 44 }
 0x160   : > { %v549_v41 = vld [vmem:[#allocation2] sm:$0xff] }
 0x161   : > { %550 = vst [vmem:[%s869_s12] sm:$0xff] %v549_v41 }
 0x162 PF: > { %s20_s23 = sadd.s32 1, %s785_s23   ;;  %s980_s20 = smov %s777_s22 }
 0x163   : > { %p17_p3 = scmp.ge.s32.totalorder %s20_s23, 18   ;;  %s981_s21 = smov %s781_s0 }
 0x164   : > { %s982_s22 = smov %s985_s24  ;;  %s983_s0 = smov %s989_s25 }
 0x165   :  { %19 = sbr.rel (!%p17_p3) target bundleno = 18 (0x12), region = 80 }

// kernel: td_lstm_forward.5
= control target key start
LH: loop header
LB: loop body
LE: loop exit
PB: predicated region body
PF: predicated region fallthrough
CT: control target
= control target key end

     0   :  { %v315_v0 = vmov 0.0   ;;  %vm316_vm0 = vmmov 0   ;;  %vm202_vm1 = vcmask 23552   ;;  %s489_s3 = inlined_call_operand.vmem [shape: f32[128,3], index: 3, kind: input, shape index: {}]   ;;  %s490_s2 = inlined_call_operand.vmem [shape: f32[128,3], index: 2, kind: input, shape index: {}]   ;;  %s491_s1 = inlined_call_operand.vmem [shape: f32[8,128], index: 1, kind: input, shape index: {}]   ;;  %s492_s0 = inlined_call_operand.vmem [shape: f32[8,128], index: 0, kind: input, shape index: {}]   ;;  %s493_s4 = inlined_call_operand.vmem [shape: f32[1,3], index: 4, kind: input, shape index: {}]   ;;  %s494_s5 = inlined_call_operand.vmem [shape: f32[8,3], index: 5, kind: output, shape index: {}]  }
   0x1   :  { %243 = vmatprep.subr.mxu0 %v315_v0  ;;  %278 = vmatprep.subr.mxu1 %v315_v0  ;;  %v53_v1 = vld [vmem:[%s489_s3 + $0x78] sm:$0xff]  ;;  %v52_v3 = vld [vmem:[%s489_s3 + $0x70] sm:$0xff]  ;;  %v51_v5 = vld [vmem:[%s489_s3 + $0x68] sm:$0xff] }
   0x2   :  { %v36_v2 = vld [vmem:[%s490_s2 + $0x78] sm:$0xff]  ;;  %244 = vmatpush3.msra.mxu0 %v53_v1  ;;  %v35_v4 = vld [vmem:[%s490_s2 + $0x70] sm:$0xff]  ;;  %v34_v6 = vld [vmem:[%s490_s2 + $0x68] sm:$0xff]  ;;  %275 = vmatprep.mubr.msk.f32.mxu0 %vm316_vm0, %v315_v0 }
   0x3   :  { %279 = vmatpush3.msra.mxu1 %v36_v2  ;;  %245 = vmatprep.subr.mxu0 %v315_v0  ;;  %v50_v7 = vld [vmem:[%s489_s3 + $0x60] sm:$0xff]  ;;  %v49_v9 = vld [vmem:[%s489_s3 + $0x58] sm:$0xff]  ;;  %v48_v11 = vld [vmem:[%s489_s3 + $0x50] sm:$0xff] }
   0x4   :  { %280 = vmatprep.subr.mxu1 %v315_v0  ;;  %246 = vmatpush3.msra.mxu0 %v52_v3  ;;  %v33_v8 = vld [vmem:[%s490_s2 + $0x60] sm:$0xff]  ;;  %v32_v10 = vld [vmem:[%s490_s2 + $0x58] sm:$0xff]  ;;  %v31_v12 = vld [vmem:[%s490_s2 + $0x50] sm:$0xff] }
   0x5   :  { %281 = vmatpush3.msra.mxu1 %v35_v4  ;;  %247 = vmatprep.subr.mxu0 %v315_v0  ;;  %v47_v13 = vld [vmem:[%s489_s3 + $0x48] sm:$0xff]  ;;  %v46_v15 = vld [vmem:[%s489_s3 + $0x40] sm:$0xff]  ;;  %v45_v17 = vld [vmem:[%s489_s3 + $0x38] sm:$0xff] }
   0x6   :  { %282 = vmatprep.subr.mxu1 %v315_v0  ;;  %248 = vmatpush3.msra.mxu0 %v51_v5  ;;  %v30_v14 = vld [vmem:[%s490_s2 + $0x48] sm:$0xff]  ;;  %v29_v16 = vld [vmem:[%s490_s2 + $0x40] sm:$0xff]  ;;  %v28_v18 = vld [vmem:[%s490_s2 + $0x38] sm:$0xff] }
   0x7   :  { %283 = vmatpush3.msra.mxu1 %v34_v6  ;;  %249 = vmatprep.subr.mxu0 %v315_v0  ;;  %v44_v19 = vld [vmem:[%s489_s3 + $0x30] sm:$0xff]  ;;  %v43_v21 = vld [vmem:[%s489_s3 + $0x28] sm:$0xff]  ;;  %v42_v23 = vld [vmem:[%s489_s3 + $0x20] sm:$0xff] }
   0x8   :  { %284 = vmatprep.subr.mxu1 %v315_v0  ;;  %250 = vmatpush3.msra.mxu0 %v50_v7  ;;  %v27_v20 = vld [vmem:[%s490_s2 + $0x30] sm:$0xff]  ;;  %v26_v22 = vld [vmem:[%s490_s2 + $0x28] sm:$0xff]  ;;  %v25_v24 = vld [vmem:[%s490_s2 + $0x20] sm:$0xff] }
   0x9   :  { %285 = vmatpush3.msra.mxu1 %v33_v8  ;;  %251 = vmatprep.subr.mxu0 %v315_v0  ;;  %v41_v25 = vld [vmem:[%s489_s3 + $0x18] sm:$0xff]  ;;  %v40_v27 = vld [vmem:[%s489_s3 + $0x10] sm:$0xff]  ;;  %v39_v29 = vld [vmem:[%s489_s3 + $0x8] sm:$0xff] }
   0xa   :  { %286 = vmatprep.subr.mxu1 %v315_v0  ;;  %252 = vmatpush3.msra.mxu0 %v49_v9  ;;  %v24_v26 = vld [vmem:[%s490_s2 + $0x18] sm:$0xff]  ;;  %v23_v28 = vld [vmem:[%s490_s2 + $0x10] sm:$0xff]  ;;  %v22_v30 = vld [vmem:[%s490_s2 + $0x8] sm:$0xff] }
   0xb   :  { %287 = vmatpush3.msra.mxu1 %v32_v10  ;;  %253 = vmatprep.subr.mxu0 %v315_v0  ;;  %v38_v31 = vld [vmem:[%s489_s3] sm:$0xff] }
   0xc   :  { %288 = vmatprep.subr.mxu1 %v315_v0  ;;  %254 = vmatpush3.msra.mxu0 %v48_v11  ;;  %v21_v32 = vld [vmem:[%s490_s2] sm:$0xff] }
   0xd   :  { %289 = vmatpush3.msra.mxu1 %v31_v12  ;;  %255 = vmatprep.subr.mxu0 %v315_v0  ;;  %v37_v33 = vld [vmem:[%s491_s1] sm:$0xff] }
   0xe   :  { %290 = vmatprep.subr.mxu1 %v315_v0  ;;  %256 = vmatpush3.msra.mxu0 %v47_v13  ;;  %v20_v34 = vld [vmem:[%s492_s0] sm:$0xff] }
   0xf   :  { %291 = vmatpush3.msra.mxu1 %v30_v14  ;;  %257 = vmatprep.subr.mxu0 %v315_v0  ;;  %v208_v37 = vld [vmem:[%s493_s4] ss:$0 sm:$0xff] }
  0x10   :  { %292 = vmatprep.subr.mxu1 %v315_v0  ;;  %258 = vmatpush3.msra.mxu0 %v46_v15 }
  0x11   :  { %293 = vmatpush3.msra.mxu1 %v29_v16  ;;  %259 = vmatprep.subr.mxu0 %v315_v0 }
  0x12   :  { %294 = vmatprep.subr.mxu1 %v315_v0  ;;  %260 = vmatpush3.msra.mxu0 %v45_v17 }
  0x13   :  { %295 = vmatpush3.msra.mxu1 %v28_v18  ;;  %261 = vmatprep.subr.mxu0 %v315_v0 }
  0x14   :  { %296 = vmatprep.subr.mxu1 %v315_v0  ;;  %262 = vmatpush3.msra.mxu0 %v44_v19 }
  0x15   :  { %297 = vmatpush3.msra.mxu1 %v27_v20  ;;  %263 = vmatprep.subr.mxu0 %v315_v0 }
  0x16   :  { %298 = vmatprep.subr.mxu1 %v315_v0  ;;  %264 = vmatpush3.msra.mxu0 %v43_v21 }
  0x17   :  { %299 = vmatpush3.msra.mxu1 %v26_v22  ;;  %265 = vmatprep.subr.mxu0 %v315_v0 }
  0x18   :  { %300 = vmatprep.subr.mxu1 %v315_v0  ;;  %266 = vmatpush3.msra.mxu0 %v42_v23 }
  0x19   :  { %301 = vmatpush3.msra.mxu1 %v25_v24  ;;  %267 = vmatprep.subr.mxu0 %v315_v0 }
  0x1a   :  { %302 = vmatprep.subr.mxu1 %v315_v0  ;;  %268 = vmatpush3.msra.mxu0 %v41_v25 }
  0x1b   :  { %303 = vmatpush3.msra.mxu1 %v24_v26  ;;  %269 = vmatprep.subr.mxu0 %v315_v0 }
  0x1c   :  { %304 = vmatprep.subr.mxu1 %v315_v0  ;;  %270 = vmatpush3.msra.mxu0 %v40_v27 }
  0x1d   :  { %305 = vmatpush3.msra.mxu1 %v23_v28  ;;  %271 = vmatprep.subr.mxu0 %v315_v0 }
  0x1e   :  { %306 = vmatprep.subr.mxu1 %v315_v0  ;;  %272 = vmatpush3.msra.mxu0 %v39_v29 }
  0x1f   :  { %307 = vmatpush3.msra.mxu1 %v22_v30  ;;  %273 = vmatprep.subr.mxu0 %v315_v0 }
  0x20   :  { %308 = vmatprep.subr.mxu1 %v315_v0  ;;  %274 = vmatpush3.msra.mxu0 %v38_v31 }
  0x21   :  { %309 = vmatpush3.msra.mxu1 %v21_v32  ;;  %310 = vmatprep.mubr.msk.f32.mxu1 %vm316_vm0, %v315_v0 }
  0x22   :  { %276 = vmatmul.mubr.f32.vlgmr.msra.gmra.mxu0 %v37_v33  ;;  %311 = vmatmul.mubr.f32.vlgmr.msra.gmra.mxu1 %v20_v34 }
  0xe2   :  { %v120_v35 = vpop.f32.mrf.mxu0  ;;  %v190_v36 = vpop.f32.mrf.mxu1 }
  0xe3   :  { %v191_v38 = vadd.f32 %v190_v36, %v120_v35 }
  0xe4   :  { %v277_v39 = vpop.f32.mrf.mxu0  ;;  %v312_v40 = vpop.f32.mrf.mxu1 }
  0xe5   :  { %v201_v41 = vadd.f32 %v208_v37, %v191_v38 }
  0xe7   :  { %203 = vst.msk [vmem:[%s494_s5] sm:$0xff] %vm202_vm1, %v201_v41 }

</bundles_post_ra>
